<compile_context>
chip_gen: v5e
topology: v5e:2x2
jax: 0.10.0
libtpu: 0.0.40
codegen_flags: <defaults>
</compile_context>

<pallas_src>
import numpy as np
import jax
import jax.numpy as jnp
from jax import lax
from jax.experimental import pallas as pl
from jax.experimental.pallas import tpu as pltpu


def _round_up(a, b):
    return (a + b - 1) // b * b


# ----------------------------- Pallas kernel --------------------------------

def _pointconv_kernel(feats_ref, w1t_ref, w2t_ref, b2_ref, out_ref):
    """Per-tile PointConv message MLP + max aggregation over K neighbors.

    feats_ref : (F, K*TN) bf16  -- K folded into lanes; k-major within the tile
    w1t_ref   : (H, F)    f32   -- b1 folded in via the trailing "ones" feature
    w2t_ref   : (OUT, H)  f32
    b2_ref    : (OUT, 1)  f32
    out_ref   : (OUT, TN) f32
    """
    tn = out_ref.shape[1]
    kk = feats_ref.shape[1] // tn

    # Widen to f32 in-kernel: f32 x f32 = f32 dots lower on every backend
    # (bf16 x bf16 -> f32 is not universally supported).
    f = feats_ref[...].astype(jnp.float32)                              # (F, K*TN)
    h = jnp.dot(w1t_ref[...], f, preferred_element_type=jnp.float32)   # (H, K*TN)
    h = jnp.maximum(h, 0.0)                                             # ReLU
    y = jnp.dot(w2t_ref[...], h, preferred_element_type=jnp.float32)   # (OUT, K*TN)

    # Segmented max over the K neighbors: K static, lane-aligned slices (VPU).
    acc = y[:, 0:tn]
    for k in range(1, kk):
        acc = jnp.maximum(acc, y[:, k * tn:(k + 1) * tn])

    out_ref[...] = acc + b2_ref[...]            # b2 added once, after the max


def pointconv_pallas(feats, w1_aug, w2, b2, *, tile_n=1024):
    """feats: (N, K, F) float; w1_aug: (F, H) with bias folded; w2: (H, OUT);
    b2: (OUT,).  Returns (N, OUT) f32 = max_k(relu(feats[:,k] @ w1_aug) @ w2) + b2.
    """
    n, k, f_raw = feats.shape
    h_dim = w1_aug.shape[1]
    out_dim = w2.shape[1]

    # Sublane-align the contraction dim.
    f_pad = max(_round_up(f_raw, 8), 8)
    if f_pad != f_raw:
        feats = jnp.pad(feats, ((0, 0), (0, 0), (0, f_pad - f_raw)))
        w1_aug = jnp.pad(w1_aug, ((0, f_pad - f_raw), (0, 0)))

    # Node tiling: lane-aligned and bounded by a rough per-step VMEM budget
    # (double-buffered bf16 feats + f32 widen + h + y + double-buffered out).
    per_node_bytes = k * (f_pad * (2 * 2 + 4) + (h_dim + out_dim) * 4) + out_dim * 8
    vmem_budget = 20 * 1024 * 1024
    cap = max(128, (vmem_budget // max(per_node_bytes, 1)) // 128 * 128)
    tile_n = min(int(tile_n), cap)
    tile_n = _round_up(min(tile_n, max(n, 1)), 128)
    n_pad = _round_up(n, tile_n)
    if n_pad != n:
        feats = jnp.pad(feats, ((0, n_pad - n), (0, 0), (0, 0)))

    grid = n_pad // tile_n

    # Lane-dense layout with K folded into lanes, k-major within each node
    # tile: column (g*K + k)*tile_n + j holds node g*tile_n + j, neighbor k.
    feats2d = (feats.reshape(grid, tile_n, k, f_pad)
                    .transpose(3, 0, 2, 1)
                    .reshape(f_pad, n_pad * k)
                    .astype(jnp.bfloat16))

    w1t = w1_aug.T.astype(jnp.float32)               # (H, F)
    w2t = w2.T.astype(jnp.float32)                   # (OUT, H)
    b2_col = b2.reshape(-1, 1).astype(jnp.float32)   # (OUT, 1)

    flops = 2 * n_pad * k * (f_pad * h_dim + h_dim * out_dim)
    bytes_accessed = (feats2d.size * feats2d.dtype.itemsize
                      + w1t.size * 4 + w2t.size * 4 + b2_col.size * 4
                      + out_dim * n_pad * 4)

    out_t = pl.pallas_call(
        _pointconv_kernel,
        out_shape=jax.ShapeDtypeStruct((out_dim, n_pad), jnp.float32),
        grid=(grid,),
        in_specs=[
            pl.BlockSpec((f_pad, k * tile_n), lambda i: (0, i)),
            pl.BlockSpec((h_dim, f_pad), lambda i: (0, 0)),
            pl.BlockSpec((out_dim, h_dim), lambda i: (0, 0)),
            pl.BlockSpec((out_dim, 1), lambda i: (0, 0)),
        ],
        out_specs=pl.BlockSpec((out_dim, tile_n), lambda i: (0, i)),
        compiler_params=pltpu.CompilerParams(
            dimension_semantics=("parallel",),
            vmem_limit_bytes=32 * 1024 * 1024),
        cost_estimate=pl.CostEstimate(
            flops=flops, transcendentals=0, bytes_accessed=bytes_accessed),
    )(feats2d, w1t, w2t, b2_col)

    # Keep the module's (N, OUT) output convention (a consumer that accepts
    # (OUT, N) could skip this transpose entirely).
    return out_t[:, :n].T


# ------------------------------ JAX glue -------------------------------------

def knn_graph(pos, batch, k_eff):
    """PyG knn_graph(pos, k, batch, loop=False, flow='source_to_target').

    Returns idx [N, k_eff]: for each target node i, its k_eff nearest same-batch
    neighbors (sources), excluding itself.  Slots with no valid same-batch
    neighbor are clamped to the node itself (harmless under max aggregation with
    self-loops).
    """
    n = pos.shape[0]
    d2 = jnp.sum((pos[:, None, :] - pos[None, :, :]) ** 2, axis=-1)      # [N, N]
    valid = (batch[:, None] == batch[None, :]) & (~jnp.eye(n, dtype=bool))
    big = jnp.float32(1e30)
    d2m = jnp.where(valid, d2, big)
    neg_d, idx = lax.top_k(-d2m, k_eff)                                  # k_eff smallest
    ok = (-neg_d) < big * 0.5
    idx = jnp.where(ok, idx, jnp.arange(n, dtype=idx.dtype)[:, None])
    return idx                                                           # [N, k_eff]


def pointconv_net3_forward(x, pos, batch, params, k_eff, *, tile_n=1024):
    """Mirrors PointConvNet3.forward: knn_graph -> PointConv(local_nn) -> tuple."""
    w1, b1, w2, b2 = params
    n = x.shape[0]

    nbr = knn_graph(pos, batch, k_eff)                                   # [N, k_eff]
    # PyG edge_index (flow='source_to_target'): row0 = sources, row1 = targets.
    edge_index = jnp.stack(
        [nbr.reshape(-1), jnp.repeat(jnp.arange(n, dtype=nbr.dtype), k_eff)], axis=0)

    # PointConv(add_self_loops=True): each target also receives its own message.
    nbr_full = jnp.concatenate(
        [nbr, jnp.arange(n, dtype=nbr.dtype)[:, None]], axis=1)          # [N, K]
    K = nbr_full.shape[1]

    x_j = x[nbr_full]                                                    # [N, K, C]
    rel = pos[nbr_full] - pos[:, None, :]                                # [N, K, 3]
    ones = jnp.ones((n, K, 1), x.dtype)                                  # bias-fold feature
    feats = jnp.concatenate([x_j, rel, ones], axis=-1)                   # [N, K, C+3+1]

    # Fold b1 into w1 (picked up by the ones feature).
    w1_aug = jnp.concatenate([w1, b1.reshape(1, -1)], axis=0)            # (C+3+1, H)

    out = pointconv_pallas(feats, w1_aug, w2, b2.reshape(-1), tile_n=tile_n)
    return out, pos, batch, edge_index


def reference_forward(x, pos, batch, params, k_eff):
    """Pure-JAX reference of the same math (feats mirrored to bf16 like the
    kernel's HBM layout; all matmuls / biases in f32)."""
    w1, b1, w2, b2 = params
    n = x.shape[0]
    nbr = knn_graph(pos, batch, k_eff)
    nbr_full = jnp.concatenate(
        [nbr, jnp.arange(n, dtype=nbr.dtype)[:, None]], axis=1)
    feats = jnp.concatenate([x[nbr_full], pos[nbr_full] - pos[:, None, :]], axis=-1)

    fb = feats.astype(jnp.bfloat16).astype(jnp.float32)
    h = jnp.maximum(fb @ w1 + b1, 0.0)
    y = h @ w2
    return jnp.max(y, axis=1) + b2


# -------------------------------- main ----------------------------------------

if __name__ == "__main__":
    # Small shapes consistent with the module: 2 point clouds of 16 points each,
    # 4 input features per point, 3-D positions,
    # local_nn = Linear(7, 32) -> ReLU -> Linear(32, 32).  knn uses k=40 (module
    # spec); with 16 points per graph only 15 neighbors exist.
    num_graphs = 2
    nodes_per_graph = 16
    n = num_graphs * nodes_per_graph
    c_in = 4
    hidden = 32
    c_out = 32
    k_knn = 40
    k_eff = min(k_knn, nodes_per_graph - 1)

    key = jax.random.PRNGKey(0)
    kx, kp, kw1, kb1, kw2, kb2 = jax.random.split(key, 6)

    x = jax.random.normal(kx, (n, c_in), dtype=jnp.float32)
    pos = jax.random.normal(kp, (n, 3), dtype=jnp.float32)
    batch = jnp.repeat(jnp.arange(num_graphs, dtype=jnp.int32), nodes_per_graph)

    f_in = c_in + 3
    w1 = (jax.random.normal(kw1, (f_in, hidden), dtype=jnp.float32)
          / jnp.sqrt(jnp.float32(f_in)))
    b1 = jax.random.normal(kb1, (1, hidden), dtype=jnp.float32) * 0.01
    w2 = (jax.random.normal(kw2, (hidden, c_out), dtype=jnp.float32)
          / jnp.sqrt(jnp.float32(hidden)))
    b2 = jax.random.normal(kb2, (1, c_out), dtype=jnp.float32) * 0.01
    params = (w1, b1, w2, b2)

    out, pos_out, batch_out, edge_index = jax.jit(
        pointconv_net3_forward, static_argnums=(4,))(x, pos, batch, params, k_eff)
    jax.block_until_ready(out)

    ref = reference_forward(x, pos, batch, params, k_eff)
    assert out.shape == (n, c_out)
    assert edge_index.shape == (2, n * k_eff)
    # bf16 feature rounding is mirrored; remaining error is f32 accumulation
    # order (and, on real MXUs, matmul pass precision).  2e-2 is comfortable.
    np.testing.assert_allclose(np.asarray(out), np.asarray(ref), rtol=2e-2, atol=2e-2)

    print("KERNEL_OK")
</pallas_src>

<mosaic_0001>
module attributes {stable_mosaic.version = 11 : i64} {
  func.func @_pointconv_kernel(%arg0: i32, %arg1: memref<8x2048xbf16, #tpu.memory_space<vmem>>, %arg2: memref<32x8xf32, #tpu.memory_space<vmem>>, %arg3: memref<32x32xf32, #tpu.memory_space<vmem>>, %arg4: memref<32x1xf32, #tpu.memory_space<vmem>>, %arg5: memref<32x128xf32, #tpu.memory_space<vmem>>) attributes {dimension_semantics = [#tpu.dimension_semantics<parallel>], iteration_bounds = array<i64: 1>, scalar_prefetch = 0 : i64, scratch_operands = 0 : i64, tpu.core_type = #tpu.core_type<tc>, window_params = [{transform_indices = @transform_0, window_bounds = array<i64: 8, 2048>}, {pipeline_mode = #tpu.pipeline_mode<synchronous>, transform_indices = @transform_1, window_bounds = array<i64: 32, 8>}, {pipeline_mode = #tpu.pipeline_mode<synchronous>, transform_indices = @transform_2, window_bounds = array<i64: 32, 32>}, {pipeline_mode = #tpu.pipeline_mode<synchronous>, transform_indices = @transform_3, window_bounds = array<i64: 32, 1>}, {transform_indices = @transform_4, window_bounds = array<i64: 32, 128>}]} {
    %c0 = arith.constant 0 : index
    %c0_0 = arith.constant 0 : index
    %0 = vector.load %arg1[%c0, %c0_0] : memref<8x2048xbf16, #tpu.memory_space<vmem>>, vector<8x2048xbf16>
    %1 = arith.extf %0 : vector<8x2048xbf16> to vector<8x2048xf32>
    %c0_1 = arith.constant 0 : index
    %c0_2 = arith.constant 0 : index
    %2 = vector.load %arg2[%c0_1, %c0_2] : memref<32x8xf32, #tpu.memory_space<vmem>>, vector<32x8xf32>
    %cst = arith.constant dense<0.000000e+00> : vector<32x2048xf32>
    %3 = tpu.matmul %2, %1, %cst {dimension_numbers = #tpu.dot_dimension_numbers<[1], [0], [0], [1], [0, 0, 1, 1], [], []>} : vector<32x8xf32>, vector<8x2048xf32>, vector<32x2048xf32> -> vector<32x2048xf32>
    %cst_3 = arith.constant 0.000000e+00 : f32
    %4 = vector.broadcast %cst_3 : f32 to vector<32x2048xf32>
    %5 = arith.maximumf %3, %4 : vector<32x2048xf32>
    %c0_4 = arith.constant 0 : index
    %c0_5 = arith.constant 0 : index
    %6 = vector.load %arg3[%c0_4, %c0_5] : memref<32x32xf32, #tpu.memory_space<vmem>>, vector<32x32xf32>
    %cst_6 = arith.constant dense<0.000000e+00> : vector<32x2048xf32>
    %7 = tpu.matmul %6, %5, %cst_6 {dimension_numbers = #tpu.dot_dimension_numbers<[1], [0], [0], [1], [0, 0, 1, 1], [], []>} : vector<32x32xf32>, vector<32x2048xf32>, vector<32x2048xf32> -> vector<32x2048xf32>
    %8 = vector.extract_strided_slice %7 {offsets = [0, 0], sizes = [32, 128], strides = [1, 1]} : vector<32x2048xf32> to vector<32x128xf32>
    %9 = vector.extract_strided_slice %7 {offsets = [0, 128], sizes = [32, 128], strides = [1, 1]} : vector<32x2048xf32> to vector<32x128xf32>
    %10 = arith.maximumf %8, %9 : vector<32x128xf32>
    %11 = vector.extract_strided_slice %7 {offsets = [0, 256], sizes = [32, 128], strides = [1, 1]} : vector<32x2048xf32> to vector<32x128xf32>
    %12 = arith.maximumf %10, %11 : vector<32x128xf32>
    %13 = vector.extract_strided_slice %7 {offsets = [0, 384], sizes = [32, 128], strides = [1, 1]} : vector<32x2048xf32> to vector<32x128xf32>
    %14 = arith.maximumf %12, %13 : vector<32x128xf32>
    %15 = vector.extract_strided_slice %7 {offsets = [0, 512], sizes = [32, 128], strides = [1, 1]} : vector<32x2048xf32> to vector<32x128xf32>
    %16 = arith.maximumf %14, %15 : vector<32x128xf32>
    %17 = vector.extract_strided_slice %7 {offsets = [0, 640], sizes = [32, 128], strides = [1, 1]} : vector<32x2048xf32> to vector<32x128xf32>
    %18 = arith.maximumf %16, %17 : vector<32x128xf32>
    %19 = vector.extract_strided_slice %7 {offsets = [0, 768], sizes = [32, 128], strides = [1, 1]} : vector<32x2048xf32> to vector<32x128xf32>
    %20 = arith.maximumf %18, %19 : vector<32x128xf32>
    %21 = vector.extract_strided_slice %7 {offsets = [0, 896], sizes = [32, 128], strides = [1, 1]} : vector<32x2048xf32> to vector<32x128xf32>
    %22 = arith.maximumf %20, %21 : vector<32x128xf32>
    %23 = vector.extract_strided_slice %7 {offsets = [0, 1024], sizes = [32, 128], strides = [1, 1]} : vector<32x2048xf32> to vector<32x128xf32>
    %24 = arith.maximumf %22, %23 : vector<32x128xf32>
    %25 = vector.extract_strided_slice %7 {offsets = [0, 1152], sizes = [32, 128], strides = [1, 1]} : vector<32x2048xf32> to vector<32x128xf32>
    %26 = arith.maximumf %24, %25 : vector<32x128xf32>
    %27 = vector.extract_strided_slice %7 {offsets = [0, 1280], sizes = [32, 128], strides = [1, 1]} : vector<32x2048xf32> to vector<32x128xf32>
    %28 = arith.maximumf %26, %27 : vector<32x128xf32>
    %29 = vector.extract_strided_slice %7 {offsets = [0, 1408], sizes = [32, 128], strides = [1, 1]} : vector<32x2048xf32> to vector<32x128xf32>
    %30 = arith.maximumf %28, %29 : vector<32x128xf32>
    %31 = vector.extract_strided_slice %7 {offsets = [0, 1536], sizes = [32, 128], strides = [1, 1]} : vector<32x2048xf32> to vector<32x128xf32>
    %32 = arith.maximumf %30, %31 : vector<32x128xf32>
    %33 = vector.extract_strided_slice %7 {offsets = [0, 1664], sizes = [32, 128], strides = [1, 1]} : vector<32x2048xf32> to vector<32x128xf32>
    %34 = arith.maximumf %32, %33 : vector<32x128xf32>
    %35 = vector.extract_strided_slice %7 {offsets = [0, 1792], sizes = [32, 128], strides = [1, 1]} : vector<32x2048xf32> to vector<32x128xf32>
    %36 = arith.maximumf %34, %35 : vector<32x128xf32>
    %37 = vector.extract_strided_slice %7 {offsets = [0, 1920], sizes = [32, 128], strides = [1, 1]} : vector<32x2048xf32> to vector<32x128xf32>
    %38 = arith.maximumf %36, %37 : vector<32x128xf32>
    %c0_7 = arith.constant 0 : index
    %c0_8 = arith.constant 0 : index
    %39 = vector.load %arg4[%c0_7, %c0_8] : memref<32x1xf32, #tpu.memory_space<vmem>>, vector<32x1xf32>
    %40 = vector.broadcast %39 : vector<32x1xf32> to vector<32x128xf32>
    %41 = arith.addf %38, %40 : vector<32x128xf32>
    %c0_9 = arith.constant 0 : index
    %c0_10 = arith.constant 0 : index
    %42 = vector.load %arg5[%c0_9, %c0_10] : memref<32x128xf32, #tpu.memory_space<vmem>>, vector<32x128xf32>
    tpu.vector_store %arg5[%c0_9, %c0_10], %41 {strides = array<i32>} : memref<32x128xf32, #tpu.memory_space<vmem>>, vector<32x128xf32>,
    return
  }
  func.func @transform_0(%arg0: i32) -> (i32, i32) {
    %c0_i32 = arith.constant 0 : i32
    %c0_i32_0 = arith.constant 0 : i32
    return %c0_i32, %arg0 : i32, i32
  }
  func.func @transform_1(%arg0: i32) -> (i32, i32) {
    %c0_i32 = arith.constant 0 : i32
    %c0_i32_0 = arith.constant 0 : i32
    %c0_i32_1 = arith.constant 0 : i32
    return %c0_i32, %c0_i32_0 : i32, i32
  }
  func.func @transform_2(%arg0: i32) -> (i32, i32) {
    %c0_i32 = arith.constant 0 : i32
    %c0_i32_0 = arith.constant 0 : i32
    %c0_i32_1 = arith.constant 0 : i32
    return %c0_i32, %c0_i32_0 : i32, i32
  }
  func.func @transform_3(%arg0: i32) -> (i32, i32) {
    %c0_i32 = arith.constant 0 : i32
    %c0_i32_0 = arith.constant 0 : i32
    %c0_i32_1 = arith.constant 0 : i32
    return %c0_i32, %c0_i32_0 : i32, i32
  }
  func.func @transform_4(%arg0: i32) -> (i32, i32) {
    %c0_i32 = arith.constant 0 : i32
    %c0_i32_0 = arith.constant 0 : i32
    return %c0_i32, %arg0 : i32, i32
  }
}

</mosaic_0001>

<bundles_post_ra>
// kernel: pointconv_net3_forward.1
= control target key start
LH: loop header
LB: loop body
LE: loop exit
PB: predicated region body
PF: predicated region fallthrough
CT: control target
= control target key end

     0   :  { %vm45_vm0 = vcmask 64512   ;;  %vm590_vm1 = vcmask 261120   ;;  %s1700_s0 = inlined_call_operand.vmem [shape: bf16[8,2048], index: 0, kind: input, shape index: {}]   ;;  %s1701_s1 = inlined_call_operand.vmem [shape: f32[32,8], index: 1, kind: input, shape index: {}]   ;;  %s1702_s2 = inlined_call_operand.vmem [shape: f32[32,32], index: 2, kind: input, shape index: {}]   ;;  %s1703_s3 = inlined_call_operand.vmem [shape: f32[32,1], index: 3, kind: input, shape index: {}]   ;;  %s1704_s4 = inlined_call_operand.vmem [shape: f32[32,128], index: 4, kind: output, shape index: {}]  }
   0x1   :  { %v17_v0 = vld [vmem:[%s1700_s0] sm:$0xff]  ;;  %v18_v1 = vld [vmem:[%s1700_s0 + $0x8] sm:$0xff]  ;;  %v20_v7 = vld [vmem:[%s1700_s0 + $0x18] sm:$0xff] }
   0x2   :  { %v25_v2 = vunpack.c.l.bf16 %v17_v0  ;;  %v26_v3 = vunpack.c.h.bf16 %v17_v0  ;;  %v27_v4 = vunpack.c.l.bf16 %v18_v1  ;;  %v28_v5 = vunpack.c.h.bf16 %v18_v1  ;;  %v1329_v6 = vld [vmem:[%s1701_s1] sm:$0xff]  ;;  %v19_v8 = vld [vmem:[%s1700_s0 + $0x10] sm:$0xff]  ;;  %v1348_v13 = vld [vmem:[%s1701_s1 + $0x8] sm:$0xff] }
   0x3   :  { %v31_v9 = vunpack.c.l.bf16 %v20_v7  ;;  %v32_v10 = vunpack.c.h.bf16 %v20_v7  ;;  %v29_v11 = vunpack.c.l.bf16 %v19_v8  ;;  %v30_v12 = vunpack.c.h.bf16 %v19_v8  ;;  %v1361_v14 = vld [vmem:[%s1701_s1 + $0x10] sm:$0xff]  ;;  %v1374_v15 = vld [vmem:[%s1701_s1 + $0x18] sm:$0xff]  ;;  %v22_v16 = vld [vmem:[%s1700_s0 + $0x28] sm:$0xff] }
   0x4   :  { %73 = vmatpush.msra.mxu0 %v25_v2  ;;  %102 = vmatpush.msra.mxu1 %v26_v3  ;;  %v21_v17 = vld [vmem:[%s1700_s0 + $0x20] sm:$0xff]  ;;  %v35_v18 = vunpack.c.l.bf16 %v22_v16  ;;  %v36_v19 = vunpack.c.h.bf16 %v22_v16  ;;  %v24_v22 = vld [vmem:[%s1700_s0 + $0x38] sm:$0xff]  ;;  %v23_v23 = vld [vmem:[%s1700_s0 + $0x30] sm:$0xff] }
   0x5   :  { %131 = vmatpush.msra.mxu2 %v27_v4  ;;  %160 = vmatpush.msra.mxu3 %v28_v5  ;;  %v33_v20 = vunpack.c.l.bf16 %v21_v17  ;;  %v34_v21 = vunpack.c.h.bf16 %v21_v17  ;;  %v39_v24 = vunpack.c.l.bf16 %v24_v22  ;;  %v40_v25 = vunpack.c.h.bf16 %v24_v22  ;;  %v1499_v56 = vld [vmem:[%s1702_s2] sm:$0xff]  ;;  %v1512_v3 = vld [vmem:[%s1702_s2 + $0x8] sm:$0xff]  ;;  %v1525_v8 = vld [vmem:[%s1702_s2 + $0x10] sm:$0xff] }
   0x6   :  { %1163 = vmatmul.msk.f32.vlgmr.msra.gmra.mxu0 %vm45_vm0, %v1329_v6  ;;  %1167 = vmatmul.msk.f32.vlgmr.msra.gmra.mxu1 %vm45_vm0, %v1329_v6  ;;  %v37_v26 = vunpack.c.l.bf16 %v23_v23  ;;  %v38_v27 = vunpack.c.h.bf16 %v23_v23 }
   0x7   :  { %1171 = vmatmul.msk.f32.vlgmr.msra.gmra.mxu2 %vm45_vm0, %v1329_v6  ;;  %1175 = vmatmul.msk.f32.vlgmr.msra.gmra.mxu3 %vm45_vm0, %v1329_v6 }
   0x8   :  { %247 = vmatpush.msrb.mxu2 %v31_v9  ;;  %276 = vmatpush.msrb.mxu3 %v32_v10 }
   0x9   :  { %189 = vmatpush.msrb.mxu0 %v29_v11  ;;  %218 = vmatpush.msrb.mxu1 %v30_v12 }
   0xa   :  { %363 = vmatpush.msra.mxu2 %v35_v18  ;;  %392 = vmatpush.msra.mxu3 %v36_v19 }
   0xb   :  { %305 = vmatpush.msra.mxu0 %v33_v20  ;;  %334 = vmatpush.msra.mxu1 %v34_v21 }
   0xe   :  { %1164 = vmatmul.msk.f32.gmra.mxu0 %vm45_vm0, %v1348_v13  ;;  %1168 = vmatmul.msk.f32.gmra.mxu1 %vm45_vm0, %v1348_v13 }
   0xf   :  { %1172 = vmatmul.msk.f32.gmra.mxu2 %vm45_vm0, %v1348_v13  ;;  %1176 = vmatmul.msk.f32.gmra.mxu3 %vm45_vm0, %v1348_v13 }
  0x16   :  { %1165 = vmatmul.msk.f32.gmra.mxu0 %vm45_vm0, %v1361_v14  ;;  %1169 = vmatmul.msk.f32.gmra.mxu1 %vm45_vm0, %v1361_v14 }
  0x17   :  { %1173 = vmatmul.msk.f32.gmra.mxu2 %vm45_vm0, %v1361_v14  ;;  %1177 = vmatmul.msk.f32.gmra.mxu3 %vm45_vm0, %v1361_v14 }
  0x1e   :  { %1166 = vmatmul.msk.f32.gmra.mxu0 %vm45_vm0, %v1374_v15  ;;  %1170 = vmatmul.msk.f32.gmra.mxu1 %vm45_vm0, %v1374_v15 }
  0x1f   :  { %1174 = vmatmul.msk.f32.gmra.mxu2 %vm45_vm0, %v1374_v15  ;;  %1178 = vmatmul.msk.f32.gmra.mxu3 %vm45_vm0, %v1374_v15 }
  0x26   :  { %1179 = vmatmul.msk.f32.vlgmr.msrb.gmra.mxu0 %vm45_vm0, %v1329_v6  ;;  %1183 = vmatmul.msk.f32.vlgmr.msrb.gmra.mxu1 %vm45_vm0, %v1329_v6 }
  0x27   :  { %1187 = vmatmul.msk.f32.vlgmr.msrb.gmra.mxu2 %vm45_vm0, %v1329_v6  ;;  %1191 = vmatmul.msk.f32.vlgmr.msrb.gmra.mxu3 %vm45_vm0, %v1329_v6 }
  0x28   :  { %479 = vmatpush.msrb.mxu2 %v39_v24  ;;  %508 = vmatpush.msrb.mxu3 %v40_v25 }
  0x29   :  { %421 = vmatpush.msrb.mxu0 %v37_v26  ;;  %450 = vmatpush.msrb.mxu1 %v38_v27 }
  0x2e   :  { %1180 = vmatmul.msk.f32.gmra.mxu0 %vm45_vm0, %v1348_v13  ;;  %1184 = vmatmul.msk.f32.gmra.mxu1 %vm45_vm0, %v1348_v13 }
  0x2f   :  { %1188 = vmatmul.msk.f32.gmra.mxu2 %vm45_vm0, %v1348_v13  ;;  %1192 = vmatmul.msk.f32.gmra.mxu3 %vm45_vm0, %v1348_v13 }
  0x36   :  { %1181 = vmatmul.msk.f32.gmra.mxu0 %vm45_vm0, %v1361_v14  ;;  %1185 = vmatmul.msk.f32.gmra.mxu1 %vm45_vm0, %v1361_v14 }
  0x37   :  { %1189 = vmatmul.msk.f32.gmra.mxu2 %vm45_vm0, %v1361_v14  ;;  %1193 = vmatmul.msk.f32.gmra.mxu3 %vm45_vm0, %v1361_v14 }
  0x3e   :  { %1182 = vmatmul.msk.f32.gmra.mxu0 %vm45_vm0, %v1374_v15  ;;  %1186 = vmatmul.msk.f32.gmra.mxu1 %vm45_vm0, %v1374_v15 }
  0x3f   :  { %1190 = vmatmul.msk.f32.gmra.mxu2 %vm45_vm0, %v1374_v15  ;;  %1194 = vmatmul.msk.f32.gmra.mxu3 %vm45_vm0, %v1374_v15 }
  0x46   :  { %1195 = vmatmul.msk.f32.vlgmr.msra.gmra.mxu0 %vm45_vm0, %v1329_v6  ;;  %1199 = vmatmul.msk.f32.vlgmr.msra.gmra.mxu1 %vm45_vm0, %v1329_v6 }
  0x47   :  { %1203 = vmatmul.msk.f32.vlgmr.msra.gmra.mxu2 %vm45_vm0, %v1329_v6  ;;  %1207 = vmatmul.msk.f32.vlgmr.msra.gmra.mxu3 %vm45_vm0, %v1329_v6 }
  0x4e   :  { %1196 = vmatmul.msk.f32.gmra.mxu0 %vm45_vm0, %v1348_v13  ;;  %1200 = vmatmul.msk.f32.gmra.mxu1 %vm45_vm0, %v1348_v13 }
  0x4f   :  { %1204 = vmatmul.msk.f32.gmra.mxu2 %vm45_vm0, %v1348_v13  ;;  %1208 = vmatmul.msk.f32.gmra.mxu3 %vm45_vm0, %v1348_v13 }
  0x56   :  { %1197 = vmatmul.msk.f32.gmra.mxu0 %vm45_vm0, %v1361_v14  ;;  %1201 = vmatmul.msk.f32.gmra.mxu1 %vm45_vm0, %v1361_v14 }
  0x57   :  { %1205 = vmatmul.msk.f32.gmra.mxu2 %vm45_vm0, %v1361_v14  ;;  %1209 = vmatmul.msk.f32.gmra.mxu3 %vm45_vm0, %v1361_v14 }
  0x5e   :  { %1198 = vmatmul.msk.f32.gmra.mxu0 %vm45_vm0, %v1374_v15  ;;  %1202 = vmatmul.msk.f32.gmra.mxu1 %vm45_vm0, %v1374_v15 }
  0x5f   :  { %1206 = vmatmul.msk.f32.gmra.mxu2 %vm45_vm0, %v1374_v15  ;;  %1210 = vmatmul.msk.f32.gmra.mxu3 %vm45_vm0, %v1374_v15 }
  0x66   :  { %1211 = vmatmul.msk.f32.vlgmr.msrb.gmra.mxu0 %vm45_vm0, %v1329_v6  ;;  %1215 = vmatmul.msk.f32.vlgmr.msrb.gmra.mxu1 %vm45_vm0, %v1329_v6 }
  0x67   :  { %1219 = vmatmul.msk.f32.vlgmr.msrb.gmra.mxu2 %vm45_vm0, %v1329_v6  ;;  %1223 = vmatmul.msk.f32.vlgmr.msrb.gmra.mxu3 %vm45_vm0, %v1329_v6 }
  0x6e   :  { %1212 = vmatmul.msk.f32.gmra.mxu0 %vm45_vm0, %v1348_v13  ;;  %1216 = vmatmul.msk.f32.gmra.mxu1 %vm45_vm0, %v1348_v13 }
  0x6f   :  { %1220 = vmatmul.msk.f32.gmra.mxu2 %vm45_vm0, %v1348_v13  ;;  %1224 = vmatmul.msk.f32.gmra.mxu3 %vm45_vm0, %v1348_v13  ;;  %v1538_v13 = vld [vmem:[%s1702_s2 + $0x18] sm:$0xff] }
  0x76   :  { %1213 = vmatmul.msk.f32.gmra.mxu0 %vm45_vm0, %v1361_v14  ;;  %1217 = vmatmul.msk.f32.gmra.mxu1 %vm45_vm0, %v1361_v14 }
  0x77   :  { %1221 = vmatmul.msk.f32.gmra.mxu2 %vm45_vm0, %v1361_v14  ;;  %1225 = vmatmul.msk.f32.gmra.mxu3 %vm45_vm0, %v1361_v14 }
  0x7e   :  { %1214 = vmatmul.msk.f32.gmra.mxu0 %vm45_vm0, %v1374_v15  ;;  %1218 = vmatmul.msk.f32.gmra.mxu1 %vm45_vm0, %v1374_v15 }
  0x7f   :  { %1222 = vmatmul.msk.f32.gmra.mxu2 %vm45_vm0, %v1374_v15  ;;  %1226 = vmatmul.msk.f32.gmra.mxu3 %vm45_vm0, %v1374_v15 }
  0x83   :  { %v75_v28 = vpop.f32.mrf.mxu0  ;;  %v104_v29 = vpop.f32.mrf.mxu1 }
  0x84   :  { %v522_v48 = vmax.f32 %v75_v28, 0.0  ;;  %v523_v49 = vmax.f32 %v104_v29, 0.0 }
  0x8a   :  { %v133_v30 = vpop.f32.mrf.mxu2  ;;  %v162_v31 = vpop.f32.mrf.mxu3 }
  0x8b   :  { %v78_v32 = vpop.f32.mrf.mxu0  ;;  %v107_v33 = vpop.f32.mrf.mxu1  ;;  %v524_v61 = vmax.f32 %v133_v30, 0.0  ;;  %v525_v62 = vmax.f32 %v162_v31, 0.0 }
  0x8c   :  { %v538_v46 = vmax.f32 %v78_v32, 0.0  ;;  %v539_v47 = vmax.f32 %v107_v33, 0.0 }
  0x92   :  { %v136_v34 = vpop.f32.mrf.mxu2  ;;  %v165_v35 = vpop.f32.mrf.mxu3 }
  0x93   :  { %v81_v36 = vpop.f32.mrf.mxu0  ;;  %v110_v37 = vpop.f32.mrf.mxu1  ;;  %v540_v59 = vmax.f32 %v136_v34, 0.0  ;;  %v541_v60 = vmax.f32 %v165_v35, 0.0 }
  0x94   :  { %v555_v42 = vmax.f32 %v110_v37, 0.0  ;;  %v554_v45 = vmax.f32 %v81_v36, 0.0 }
  0x9a   :  { %v139_v38 = vpop.f32.mrf.mxu2  ;;  %v168_v39 = vpop.f32.mrf.mxu3 }
  0x9b   :  { %v84_v40 = vpop.f32.mrf.mxu0  ;;  %v113_v41 = vpop.f32.mrf.mxu1  ;;  %v556_v57 = vmax.f32 %v139_v38, 0.0  ;;  %v557_v58 = vmax.f32 %v168_v39, 0.0 }
  0x9c   :  { %v570_v43 = vmax.f32 %v84_v40, 0.0  ;;  %v571_v44 = vmax.f32 %v113_v41, 0.0 }
  0x9e   :  { %615 = vmatpush.msra.mxu0 %v570_v43  ;;  %644 = vmatpush.msra.mxu1 %v571_v44 }
  0xa0   :  { %616 = vmatpush.msra.mxu0 %v554_v45  ;;  %645 = vmatpush.msra.mxu1 %v555_v42 }
  0xa2   :  { %v142_v50 = vpop.f32.mrf.mxu2  ;;  %v171_v51 = vpop.f32.mrf.mxu3  ;;  %617 = vmatpush.msra.mxu0 %v538_v46  ;;  %646 = vmatpush.msra.mxu1 %v539_v47 }
  0xa3   :  { %v572_v52 = vmax.f32 %v142_v50, 0.0  ;;  %v573_v53 = vmax.f32 %v171_v51, 0.0  ;;  %v1492_v54 = vpop.f32.mrf.mxu0  ;;  %v1494_v55 = vpop.f32.mrf.mxu1 }
  0xa4   :  { %618 = vmatpush.msra.mxu0 %v522_v48  ;;  %647 = vmatpush.msra.mxu1 %v523_v49  ;;  %v527_v20 = vmax.f32 %v1494_v55, 0.0  ;;  %v526_v23 = vmax.f32 %v1492_v54, 0.0 }
  0xa5   :  { %673 = vmatpush.msra.mxu2 %v572_v52  ;;  %702 = vmatpush.msra.mxu3 %v573_v53 }
  0xa6   :  { %1227 = vmatmul.msk.f32.vlgmr.msra.gmra.mxu0 %vm590_vm1, %v1499_v56  ;;  %1231 = vmatmul.msk.f32.vlgmr.msra.gmra.mxu1 %vm590_vm1, %v1499_v56 }
  0xa7   :  { %674 = vmatpush.msra.mxu2 %v556_v57  ;;  %703 = vmatpush.msra.mxu3 %v557_v58 }
  0xa9   :  { %675 = vmatpush.msra.mxu2 %v540_v59  ;;  %704 = vmatpush.msra.mxu3 %v541_v60 }
  0xaa   :  { %v1505_v63 = vpop.f32.mrf.mxu2  ;;  %v1507_v0 = vpop.f32.mrf.mxu3 }
  0xab   :  { %676 = vmatpush.msra.mxu2 %v524_v61  ;;  %705 = vmatpush.msra.mxu3 %v525_v62  ;;  %v194_v1 = vpop.f32.mrf.mxu0  ;;  %v223_v2 = vpop.f32.mrf.mxu1  ;;  %v528_v32 = vmax.f32 %v1505_v63, 0.0  ;;  %v529_v33 = vmax.f32 %v1507_v0, 0.0 }
  0xac   :  { %1235 = vmatmul.msk.f32.vlgmr.msra.gmra.mxu2 %vm590_vm1, %v1499_v56  ;;  %1239 = vmatmul.msk.f32.vlgmr.msra.gmra.mxu3 %vm590_vm1, %v1499_v56  ;;  %v543_v18 = vmax.f32 %v223_v2, 0.0  ;;  %v542_v19 = vmax.f32 %v194_v1, 0.0 }
  0xae   :  { %1228 = vmatmul.msk.f32.gmra.mxu0 %vm590_vm1, %v1512_v3  ;;  %1232 = vmatmul.msk.f32.gmra.mxu1 %vm590_vm1, %v1512_v3 }
  0xb2   :  { %v252_v4 = vpop.f32.mrf.mxu2  ;;  %v281_v5 = vpop.f32.mrf.mxu3 }
  0xb3   :  { %v197_v6 = vpop.f32.mrf.mxu0  ;;  %v226_v7 = vpop.f32.mrf.mxu1  ;;  %v544_v30 = vmax.f32 %v252_v4, 0.0  ;;  %v545_v31 = vmax.f32 %v281_v5, 0.0 }
  0xb4   :  { %1236 = vmatmul.msk.f32.gmra.mxu2 %vm590_vm1, %v1512_v3  ;;  %1240 = vmatmul.msk.f32.gmra.mxu3 %vm590_vm1, %v1512_v3  ;;  %v559_v14 = vmax.f32 %v226_v7, 0.0  ;;  %v558_v17 = vmax.f32 %v197_v6, 0.0 }
  0xb6   :  { %1229 = vmatmul.msk.f32.gmra.mxu0 %vm590_vm1, %v1525_v8  ;;  %1233 = vmatmul.msk.f32.gmra.mxu1 %vm590_vm1, %v1525_v8 }
  0xba   :  { %v255_v9 = vpop.f32.mrf.mxu2  ;;  %v284_v10 = vpop.f32.mrf.mxu3 }
  0xbb   :  { %v200_v11 = vpop.f32.mrf.mxu0  ;;  %v229_v12 = vpop.f32.mrf.mxu1  ;;  %v560_v28 = vmax.f32 %v255_v9, 0.0  ;;  %v561_v29 = vmax.f32 %v284_v10, 0.0 }
  0xbc   :  { %v574_v15 = vmax.f32 %v200_v11, 0.0  ;;  %v575_v16 = vmax.f32 %v229_v12, 0.0  ;;  %1237 = vmatmul.msk.f32.gmra.mxu2 %vm590_vm1, %v1525_v8  ;;  %1241 = vmatmul.msk.f32.gmra.mxu3 %vm590_vm1, %v1525_v8 }
  0xbe   :  { %1230 = vmatmul.msk.f32.gmra.mxu0 %vm590_vm1, %v1538_v13  ;;  %760 = vmatpush.msrb.mxu1 %v575_v16 }
  0xbf   :  { %731 = vmatpush.msrb.mxu0 %v574_v15  ;;  %1234 = vmatmul.msk.f32.gmra.mxu1 %vm590_vm1, %v1538_v13 }
  0xc0   :  { %761 = vmatpush.msrb.mxu1 %v559_v14 }
  0xc1   :  { %732 = vmatpush.msrb.mxu0 %v558_v17 }
  0xc2   :  { %v258_v21 = vpop.f32.mrf.mxu2  ;;  %v287_v22 = vpop.f32.mrf.mxu3  ;;  %762 = vmatpush.msrb.mxu1 %v543_v18 }
  0xc3   :  { %v576_v24 = vmax.f32 %v258_v21, 0.0  ;;  %v577_v25 = vmax.f32 %v287_v22, 0.0  ;;  %733 = vmatpush.msrb.mxu0 %v542_v19  ;;  %v1550_v26 = vpop.f32.mrf.mxu0  ;;  %v1552_v27 = vpop.f32.mrf.mxu1 }
  0xc4   :  { %1238 = vmatmul.msk.f32.gmra.mxu2 %vm590_vm1, %v1538_v13  ;;  %763 = vmatpush.msrb.mxu1 %v527_v20  ;;  %v530_v54 = vmax.f32 %v1550_v26, 0.0  ;;  %v531_v55 = vmax.f32 %v1552_v27, 0.0 }
  0xc5   :  { %734 = vmatpush.msrb.mxu0 %v526_v23  ;;  %789 = vmatpush.msrb.mxu2 %v576_v24  ;;  %v1294_v24 = vmov 0  }
  0xc6   :  { %818 = vmatpush.msrb.mxu3 %v577_v25  ;;  %1243 = vmatmul.msk.f32.vlgmr.msrb.gmra.mxu0 %vm590_vm1, %v1499_v56  ;;  %v1127_v25 = vld [vmem:[%s1703_s3] sm:$0xff] }
  0xc7   :  { %1242 = vmatmul.msk.f32.gmra.mxu3 %vm590_vm1, %v1538_v13  ;;  %790 = vmatpush.msrb.mxu2 %v560_v28 }
  0xc8   :  { %819 = vmatpush.msrb.mxu3 %v561_v29  ;;  %1247 = vmatmul.msk.f32.vlgmr.msrb.gmra.mxu1 %vm590_vm1, %v1499_v56 }
  0xc9   :  { %791 = vmatpush.msrb.mxu2 %v544_v30  ;;  %1292 = vset.pattern.permute.xlu0 %v1294_v24 }
  0xca   :  { %820 = vmatpush.msrb.mxu3 %v545_v31  ;;  %v1564_v34 = vpop.f32.mrf.mxu2  ;;  %v1566_v35 = vpop.f32.mrf.mxu3  ;;  %1133 = vperm.xlu0 %1292, %v1127_v25  }
  0xcb   :  { %792 = vmatpush.msrb.mxu2 %v528_v32  ;;  %v310_v36 = vpop.f32.mrf.mxu0  ;;  %v339_v37 = vpop.f32.mrf.mxu1  ;;  %v532_v1 = vmax.f32 %v1564_v34, 0.0  ;;  %v533_v2 = vmax.f32 %v1566_v35, 0.0  ;;  %1293 = vset.pattern.permute.xlu1 %v1294_v24 }
  0xcc   :  { %821 = vmatpush.msrb.mxu3 %v529_v33  ;;  %1251 = vmatmul.msk.f32.vlgmr.msrb.gmra.mxu2 %vm590_vm1, %v1499_v56  ;;  %v546_v50 = vmax.f32 %v310_v36, 0.0  ;;  %v547_v51 = vmax.f32 %v339_v37, 0.0  ;;  %v1128_v36 = vld [vmem:[%s1703_s3 + $0x8] sm:$0xff]  ;;  %v1129_v37 = vld [vmem:[%s1703_s3 + $0x10] sm:$0xff] }
  0xcd   :  { %1143 = vperm.xlu1 %1293, %v1129_v37  }
  0xce   :  { %1244 = vmatmul.msk.f32.gmra.mxu0 %vm590_vm1, %v1512_v3 }
  0xcf   :  { %1255 = vmatmul.msk.f32.vlgmr.msrb.gmra.mxu3 %vm590_vm1, %v1499_v56 }
  0xd0   :  { %1248 = vmatmul.msk.f32.gmra.mxu1 %vm590_vm1, %v1512_v3 }
  0xd2   :  { %v368_v38 = vpop.f32.mrf.mxu2  ;;  %v397_v39 = vpop.f32.mrf.mxu3  ;;  %1138 = vperm.xlu0 %1292, %v1128_v36  }
  0xd3   :  { %v313_v40 = vpop.f32.mrf.mxu0  ;;  %v342_v41 = vpop.f32.mrf.mxu1  ;;  %v548_v63 = vmax.f32 %v368_v38, 0.0  ;;  %v549_v0 = vmax.f32 %v397_v39, 0.0 }
  0xd4   :  { %1252 = vmatmul.msk.f32.gmra.mxu2 %vm590_vm1, %v1512_v3  ;;  %v563_v48 = vmax.f32 %v342_v41, 0.0  ;;  %v562_v49 = vmax.f32 %v313_v40, 0.0  ;;  %v1130_v40 = vld [vmem:[%s1703_s3 + $0x18] sm:$0xff] }
  0xd5   :  { %1148 = vperm.xlu1 %1293, %v1130_v40  }
  0xd6   :  { %1245 = vmatmul.msk.f32.gmra.mxu0 %vm590_vm1, %v1525_v8 }
  0xd7   :  { %1256 = vmatmul.msk.f32.gmra.mxu3 %vm590_vm1, %v1512_v3 }
  0xd8   :  { %1249 = vmatmul.msk.f32.gmra.mxu1 %vm590_vm1, %v1525_v8 }
  0xda   :  { %v371_v42 = vpop.f32.mrf.mxu2  ;;  %v400_v43 = vpop.f32.mrf.mxu3 }
  0xdb   :  { %v316_v44 = vpop.f32.mrf.mxu0  ;;  %v345_v45 = vpop.f32.mrf.mxu1  ;;  %v564_v61 = vmax.f32 %v371_v42, 0.0  ;;  %v565_v62 = vmax.f32 %v400_v43, 0.0 }
  0xdc   :  { %v578_v46 = vmax.f32 %v316_v44, 0.0  ;;  %v579_v47 = vmax.f32 %v345_v45, 0.0  ;;  %1253 = vmatmul.msk.f32.gmra.mxu2 %vm590_vm1, %v1525_v8 }
  0xde   :  { %1246 = vmatmul.msk.f32.gmra.mxu0 %vm590_vm1, %v1538_v13  ;;  %876 = vmatpush.msra.mxu1 %v579_v47 }
  0xdf   :  { %1257 = vmatmul.msk.f32.gmra.mxu3 %vm590_vm1, %v1525_v8  ;;  %847 = vmatpush.msra.mxu0 %v578_v46 }
  0xe0   :  { %1250 = vmatmul.msk.f32.gmra.mxu1 %vm590_vm1, %v1538_v13 }
  0xe1   :  { %848 = vmatpush.msra.mxu0 %v562_v49  ;;  %877 = vmatpush.msra.mxu1 %v563_v48 }
  0xe2   :  { %v374_v52 = vpop.f32.mrf.mxu2  ;;  %v403_v53 = vpop.f32.mrf.mxu3 }
  0xe3   :  { %v580_v57 = vmax.f32 %v374_v52, 0.0  ;;  %v581_v58 = vmax.f32 %v403_v53, 0.0  ;;  %849 = vmatpush.msra.mxu0 %v546_v50  ;;  %878 = vmatpush.msra.mxu1 %v547_v51  ;;  %v1594_v59 = vpop.f32.mrf.mxu0  ;;  %v1596_v60 = vpop.f32.mrf.mxu1 }
  0xe4   :  { %1254 = vmatmul.msk.f32.gmra.mxu2 %vm590_vm1, %v1538_v13  ;;  %v534_v26 = vmax.f32 %v1594_v59, 0.0  ;;  %v535_v27 = vmax.f32 %v1596_v60, 0.0 }
  0xe5   :  { %850 = vmatpush.msra.mxu0 %v530_v54  ;;  %879 = vmatpush.msra.mxu1 %v531_v55 }
  0xe6   :  { %905 = vmatpush.msra.mxu2 %v580_v57  ;;  %934 = vmatpush.msra.mxu3 %v581_v58 }
  0xe7   :  { %1258 = vmatmul.msk.f32.gmra.mxu3 %vm590_vm1, %v1538_v13  ;;  %1259 = vmatmul.msk.f32.vlgmr.msra.gmra.mxu0 %vm590_vm1, %v1499_v56 }
  0xe8   :  { %906 = vmatpush.msra.mxu2 %v564_v61  ;;  %935 = vmatpush.msra.mxu3 %v565_v62 }
  0xe9   :  { %1263 = vmatmul.msk.f32.vlgmr.msra.gmra.mxu1 %vm590_vm1, %v1499_v56 }
  0xea   :  { %907 = vmatpush.msra.mxu2 %v548_v63  ;;  %936 = vmatpush.msra.mxu3 %v549_v0  ;;  %v1608_v4 = vpop.f32.mrf.mxu2  ;;  %v1610_v5 = vpop.f32.mrf.mxu3 }
  0xeb   :  { %v426_v6 = vpop.f32.mrf.mxu0  ;;  %v455_v7 = vpop.f32.mrf.mxu1  ;;  %v536_v38 = vmax.f32 %v1608_v4, 0.0  ;;  %v537_v39 = vmax.f32 %v1610_v5, 0.0 }
  0xec   :  { %908 = vmatpush.msra.mxu2 %v532_v1  ;;  %937 = vmatpush.msra.mxu3 %v533_v2  ;;  %v550_v22 = vmax.f32 %v426_v6, 0.0  ;;  %v551_v23 = vmax.f32 %v455_v7, 0.0 }
  0xed   :  { %1267 = vmatmul.msk.f32.vlgmr.msra.gmra.mxu2 %vm590_vm1, %v1499_v56 }
  0xef   :  { %1260 = vmatmul.msk.f32.gmra.mxu0 %vm590_vm1, %v1512_v3  ;;  %1271 = vmatmul.msk.f32.vlgmr.msra.gmra.mxu3 %vm590_vm1, %v1499_v56 }
  0xf1   :  { %1264 = vmatmul.msk.f32.gmra.mxu1 %vm590_vm1, %v1512_v3 }
  0xf2   :  { %v484_v9 = vpop.f32.mrf.mxu2  ;;  %v513_v10 = vpop.f32.mrf.mxu3 }
  0xf3   :  { %v429_v11 = vpop.f32.mrf.mxu0  ;;  %v458_v12 = vpop.f32.mrf.mxu1  ;;  %v552_v34 = vmax.f32 %v484_v9, 0.0  ;;  %v553_v35 = vmax.f32 %v513_v10, 0.0 }
  0xf4   :  { %v567_v18 = vmax.f32 %v458_v12, 0.0  ;;  %v566_v21 = vmax.f32 %v429_v11, 0.0 }
  0xf5   :  { %1268 = vmatmul.msk.f32.gmra.mxu2 %vm590_vm1, %v1512_v3 }
  0xf7   :  { %1261 = vmatmul.msk.f32.gmra.mxu0 %vm590_vm1, %v1525_v8  ;;  %1272 = vmatmul.msk.f32.gmra.mxu3 %vm590_vm1, %v1512_v3 }
  0xf9   :  { %1265 = vmatmul.msk.f32.gmra.mxu1 %vm590_vm1, %v1525_v8 }
  0xfa   :  { %v487_v14 = vpop.f32.mrf.mxu2  ;;  %v516_v15 = vpop.f32.mrf.mxu3 }
  0xfb   :  { %v432_v16 = vpop.f32.mrf.mxu0  ;;  %v461_v17 = vpop.f32.mrf.mxu1  ;;  %v568_v32 = vmax.f32 %v487_v14, 0.0  ;;  %v569_v33 = vmax.f32 %v516_v15, 0.0 }
  0xfc   :  { %v582_v19 = vmax.f32 %v432_v16, 0.0  ;;  %v583_v20 = vmax.f32 %v461_v17, 0.0 }
  0xfd   :  { %1269 = vmatmul.msk.f32.gmra.mxu2 %vm590_vm1, %v1525_v8 }
  0xfe   :  { %963 = vmatpush.msrb.mxu0 %v582_v19  ;;  %992 = vmatpush.msrb.mxu1 %v583_v20 }
  0xff   :  { %1262 = vmatmul.msk.f32.gmra.mxu0 %vm590_vm1, %v1538_v13  ;;  %1273 = vmatmul.msk.f32.gmra.mxu3 %vm590_vm1, %v1525_v8 }
 0x100   :  { %964 = vmatpush.msrb.mxu0 %v566_v21  ;;  %993 = vmatpush.msrb.mxu1 %v567_v18 }
 0x101   :  { %1266 = vmatmul.msk.f32.gmra.mxu1 %vm590_vm1, %v1538_v13 }
 0x102   :  { %v490_v28 = vpop.f32.mrf.mxu2  ;;  %v519_v29 = vpop.f32.mrf.mxu3  ;;  %965 = vmatpush.msrb.mxu0 %v550_v22  ;;  %994 = vmatpush.msrb.mxu1 %v551_v23 }
 0x103   :  { %v584_v30 = vmax.f32 %v490_v28, 0.0  ;;  %v585_v31 = vmax.f32 %v519_v29, 0.0 }
 0x104   :  { %966 = vmatpush.msrb.mxu0 %v534_v26  ;;  %995 = vmatpush.msrb.mxu1 %v535_v27 }
 0x105   :  { %1270 = vmatmul.msk.f32.gmra.mxu2 %vm590_vm1, %v1538_v13  ;;  %1050 = vmatpush.msrb.mxu3 %v585_v31 }
 0x106   :  { %1021 = vmatpush.msrb.mxu2 %v584_v30 }
 0x107   :  { %1274 = vmatmul.msk.f32.gmra.mxu3 %vm590_vm1, %v1538_v13  ;;  %1275 = vmatmul.msk.f32.vlgmr.msrb.gmra.mxu0 %vm590_vm1, %v1499_v56 }
 0x108   :  { %1022 = vmatpush.msrb.mxu2 %v568_v32  ;;  %1051 = vmatpush.msrb.mxu3 %v569_v33 }
 0x109   :  { %1279 = vmatmul.msk.f32.vlgmr.msrb.gmra.mxu1 %vm590_vm1, %v1499_v56 }
 0x10a   :  { %1023 = vmatpush.msrb.mxu2 %v552_v34  ;;  %1052 = vmatpush.msrb.mxu3 %v553_v35 }
 0x10c   :  { %1024 = vmatpush.msrb.mxu2 %v536_v38  ;;  %1053 = vmatpush.msrb.mxu3 %v537_v39 }
 0x10d   :  { %1283 = vmatmul.msk.f32.vlgmr.msrb.gmra.mxu2 %vm590_vm1, %v1499_v56 }
 0x10f   :  { %1276 = vmatmul.msk.f32.gmra.mxu0 %vm590_vm1, %v1512_v3  ;;  %1287 = vmatmul.msk.f32.vlgmr.msrb.gmra.mxu3 %vm590_vm1, %v1499_v56 }
 0x111   :  { %1280 = vmatmul.msk.f32.gmra.mxu1 %vm590_vm1, %v1512_v3 }
 0x115   :  { %1284 = vmatmul.msk.f32.gmra.mxu2 %vm590_vm1, %v1512_v3 }
 0x117   :  { %1277 = vmatmul.msk.f32.gmra.mxu0 %vm590_vm1, %v1525_v8  ;;  %1288 = vmatmul.msk.f32.gmra.mxu3 %vm590_vm1, %v1512_v3 }
 0x119   :  { %1281 = vmatmul.msk.f32.gmra.mxu1 %vm590_vm1, %v1525_v8 }
 0x11d   :  { %1285 = vmatmul.msk.f32.gmra.mxu2 %vm590_vm1, %v1525_v8 }
 0x11f   :  { %1278 = vmatmul.msk.f32.gmra.mxu0 %vm590_vm1, %v1538_v13  ;;  %1289 = vmatmul.msk.f32.gmra.mxu3 %vm590_vm1, %v1525_v8 }
 0x121   :  { %1282 = vmatmul.msk.f32.gmra.mxu1 %vm590_vm1, %v1538_v13 }
 0x123   :  { %v620_v56 = vpop.f32.mrf.mxu0  ;;  %v649_v41 = vpop.f32.mrf.mxu1 }
 0x124   :  { %v1067_v42 = vmax.f32 %v620_v56, %v649_v41 }
 0x125   :  { %1286 = vmatmul.msk.f32.gmra.mxu2 %vm590_vm1, %v1538_v13 }
 0x127   :  { %1290 = vmatmul.msk.f32.gmra.mxu3 %vm590_vm1, %v1538_v13 }
 0x12b   :  { %v623_v3 = vpop.f32.mrf.mxu0  ;;  %v652_v43 = vpop.f32.mrf.mxu1 }
 0x12c   :  { %v1068_v44 = vmax.f32 %v623_v3, %v652_v43 }
 0x12f   :  { %v678_v45 = vpop.f32.mrf.mxu2  ;;  %v707_v46 = vpop.f32.mrf.mxu3 }
 0x130   :  { %v1071_v47 = vmax.f32 %v1067_v42, %v678_v45 }
 0x132   :  { %v1075_v48 = vmax.f32 %v1071_v47, %v707_v46 }
 0x133   :  { %v626_v8 = vpop.f32.mrf.mxu0  ;;  %v655_v49 = vpop.f32.mrf.mxu1 }
 0x134   :  { %v1069_v50 = vmax.f32 %v626_v8, %v655_v49 }
 0x137   :  { %v681_v51 = vpop.f32.mrf.mxu2  ;;  %v710_v52 = vpop.f32.mrf.mxu3 }
 0x138   :  { %v1072_v53 = vmax.f32 %v1068_v44, %v681_v51 }
 0x13a   :  { %v1076_v54 = vmax.f32 %v1072_v53, %v710_v52 }
 0x13b   :  { %v629_v55 = vpop.f32.mrf.mxu0 }
 0x13c   :  { %v658_v57 = vpop.f32.mrf.mxu1 }
 0x13d   :  { %v1070_v58 = vmax.f32 %v629_v55, %v658_v57 }
 0x13f   :  { %v684_v59 = vpop.f32.mrf.mxu2  ;;  %v713_v60 = vpop.f32.mrf.mxu3 }
 0x140   :  { %v1073_v13 = vmax.f32 %v1069_v50, %v684_v59 }
 0x142   :  { %v1077_v61 = vmax.f32 %v1073_v13, %v713_v60 }
 0x143   :  { %v736_v62 = vpop.f32.mrf.mxu0 }
 0x144   :  { %v1079_v27 = vmax.f32 %v1075_v48, %v736_v62 }
 0x145   :  { %v765_v63 = vpop.f32.mrf.mxu1 }
 0x146   :  { %v1083_v30 = vmax.f32 %v1079_v27, %v765_v63 }
 0x147   :  { %v687_v0 = vpop.f32.mrf.mxu2 }
 0x148   :  { %v1074_v1 = vmax.f32 %v1070_v58, %v687_v0 }
 0x14a   :  { %v716_v2 = vpop.f32.mrf.mxu3 }
 0x14b   :  { %v1078_v4 = vmax.f32 %v1074_v1, %v716_v2  ;;  %v739_v5 = vpop.f32.mrf.mxu0 }
 0x14c   :  { %v1080_v34 = vmax.f32 %v1076_v54, %v739_v5 }
 0x14d   :  { %v768_v6 = vpop.f32.mrf.mxu1 }
 0x14e   :  { %v1084_v38 = vmax.f32 %v1080_v34, %v768_v6 }
 0x14f   :  { %v794_v7 = vpop.f32.mrf.mxu2 }
 0x150   :  { %v1087_v32 = vmax.f32 %v1083_v30, %v794_v7 }
 0x152   :  { %v823_v9 = vpop.f32.mrf.mxu3 }
 0x153   :  { %v742_v10 = vpop.f32.mrf.mxu0  ;;  %v1091_v36 = vmax.f32 %v1087_v32, %v823_v9 }
 0x154   :  { %v1081_v42 = vmax.f32 %v1077_v61, %v742_v10  ;;  %v1134_v61 = vpop.permute.xlu0 %1133 }
 0x155   :  { %v771_v11 = vpop.f32.mrf.mxu1 }
 0x156   :  { %v1085_v47 = vmax.f32 %v1081_v42, %v771_v11 }
 0x157   :  { %v797_v12 = vpop.f32.mrf.mxu2 }
 0x158   :  { %v1088_v56 = vmax.f32 %v1084_v38, %v797_v12 }
 0x15a   :  { %v826_v14 = vpop.f32.mrf.mxu3 }
 0x15b   :  { %v745_v15 = vpop.f32.mrf.mxu0  ;;  %v1092_v44 = vmax.f32 %v1088_v56, %v826_v14 }
 0x15c   :  { %v1082_v52 = vmax.f32 %v1078_v4, %v745_v15 }
 0x15d   :  { %v774_v16 = vpop.f32.mrf.mxu1 }
 0x15e   :  { %v1086_v59 = vmax.f32 %v1082_v52, %v774_v16 }
 0x15f   :  { %v800_v17 = vpop.f32.mrf.mxu2 }
 0x160   :  { %v1089_v49 = vmax.f32 %v1085_v47, %v800_v17 }
 0x162   :  { %v829_v18 = vpop.f32.mrf.mxu3 }
 0x163   :  { %v1093_v57 = vmax.f32 %v1089_v49, %v829_v18 }
 0x164   :  { %v852_v19 = vpop.f32.mrf.mxu0 }
 0x165   :  { %v1095_v39 = vmax.f32 %v1091_v36, %v852_v19  ;;  %v1139_v19 = vpop.permute.xlu0 %1138 }
 0x166   :  { %v881_v20 = vpop.f32.mrf.mxu1 }
 0x167   :  { %v803_v21 = vpop.f32.mrf.mxu2  ;;  %v1099_v3 = vmax.f32 %v1095_v39, %v881_v20 }
 0x168   :  { %v1090_v0 = vmax.f32 %v1086_v59, %v803_v21 }
 0x16a   :  { %v832_v22 = vpop.f32.mrf.mxu3 }
 0x16b   :  { %v1094_v10 = vmax.f32 %v1090_v0, %v832_v22 }
 0x16c   :  { %v855_v23 = vpop.f32.mrf.mxu0 }
 0x16d   :  { %v1096_v48 = vmax.f32 %v1092_v44, %v855_v23 }
 0x16e   :  { %v884_v24 = vpop.f32.mrf.mxu1 }
 0x16f   :  { %v1100_v53 = vmax.f32 %v1096_v48, %v884_v24 }
 0x170   :  { %v910_v25 = vpop.f32.mrf.mxu2 }
 0x171   :  { %v1103_v45 = vmax.f32 %v1099_v3, %v910_v25 }
 0x172   :  { %v939_v26 = vpop.f32.mrf.mxu3 }
 0x173   :  { %v1107_v50 = vmax.f32 %v1103_v45, %v939_v26 }
 0x174   :  { %v858_v28 = vpop.f32.mrf.mxu0 }
 0x175   :  { %v1097_v60 = vmax.f32 %v1093_v57, %v858_v28 }
 0x176   :  { %v887_v29 = vpop.f32.mrf.mxu1 }
 0x177   :  { %v1101_v6 = vmax.f32 %v1097_v60, %v887_v29 }
 0x178   :  { %v913_v31 = vpop.f32.mrf.mxu2 }
 0x179   :  { %v1104_v58 = vmax.f32 %v1100_v53, %v913_v31 }
 0x17a   :  { %v942_v33 = vpop.f32.mrf.mxu3 }
 0x17b   :  { %v1108_v1 = vmax.f32 %v1104_v58, %v942_v33  ;;  %v1144_v33 = vpop.permute.xlu1 %1143 }
 0x17c   :  { %v861_v35 = vpop.f32.mrf.mxu0 }
 0x17d   :  { %v1098_v14 = vmax.f32 %v1094_v10, %v861_v35 }
 0x17e   :  { %v890_v37 = vpop.f32.mrf.mxu1 }
 0x17f   :  { %v1102_v23 = vmax.f32 %v1098_v14, %v890_v37 }
 0x180   :  { %v916_v40 = vpop.f32.mrf.mxu2 }
 0x181   :  { %v1105_v4 = vmax.f32 %v1101_v6, %v916_v40 }
 0x182   :  { %v945_v41 = vpop.f32.mrf.mxu3 }
 0x183   :  { %v1109_v17 = vmax.f32 %v1105_v4, %v945_v41  ;;  %v1149_v42 = vpop.permute.xlu1 %1148 }
 0x184   :  { %v968_v43 = vpop.f32.mrf.mxu0 }
 0x185   :  { %v1111_v54 = vmax.f32 %v1107_v50, %v968_v43 }
 0x186   :  { %v997_v46 = vpop.f32.mrf.mxu1 }
 0x187   :  { %v1115_v13 = vmax.f32 %v1111_v54, %v997_v46 }
 0x188   :  { %v919_v8 = vpop.f32.mrf.mxu2 }
 0x189   :  { %v1106_v26 = vmax.f32 %v1102_v23, %v919_v8 }
 0x18a   :  { %v948_v51 = vpop.f32.mrf.mxu3 }
 0x18b   :  { %v1110_v30 = vmax.f32 %v1106_v26, %v948_v51 }
 0x18c   :  { %v971_v55 = vpop.f32.mrf.mxu0 }
 0x18d   :  { %v1112_v7 = vmax.f32 %v1108_v1, %v971_v55 }
 0x18e   :  { %v1000_v62 = vpop.f32.mrf.mxu1 }
 0x18f   :  { %v1116_v15 = vmax.f32 %v1112_v7, %v1000_v62 }
 0x190   :  { %v1026_v63 = vpop.f32.mrf.mxu2 }
 0x191   :  { %v1119_v2 = vmax.f32 %v1115_v13, %v1026_v63 }
 0x192   :  { %v1055_v5 = vpop.f32.mrf.mxu3 }
 0x193   :  { %v1123_v9 = vmax.f32 %v1119_v2, %v1055_v5 }
 0x194   :  { %v974_v12 = vpop.f32.mrf.mxu0 }
 0x195   :  { %v1151_v11 = vadd.f32 %v1134_v61, %v1123_v9  ;;  %v1113_v24 = vmax.f32 %v1109_v17, %v974_v12 }
 0x196   :  { %v1003_v20 = vpop.f32.mrf.mxu1 }
 0x197   :  { %1155 = vst [vmem:[%s1704_s4] sm:$0xff] %v1151_v11  ;;  %v1117_v27 = vmax.f32 %v1113_v24, %v1003_v20 }
 0x198   :  { %v1029_v16 = vpop.f32.mrf.mxu2 }
 0x199   :  { %v1120_v18 = vmax.f32 %v1116_v15, %v1029_v16 }
 0x19a   :  { %v1058_v21 = vpop.f32.mrf.mxu3 }
 0x19b   :  { %v1124_v25 = vmax.f32 %v1120_v18, %v1058_v21 }
 0x19c   :  { %v977_v28 = vpop.f32.mrf.mxu0 }
 0x19d   :  { %v1152_v22 = vadd.f32 %v1139_v19, %v1124_v25  ;;  %v1114_v34 = vmax.f32 %v1110_v30, %v977_v28 }
 0x19e   :  { %v1006_v36 = vpop.f32.mrf.mxu1 }
 0x19f   :  { %1156 = vst [vmem:[%s1704_s4 + $0x8] sm:$0xff] %v1152_v22  ;;  %v1118_v37 = vmax.f32 %v1114_v34, %v1006_v36 }
 0x1a0   :  { %v1032_v29 = vpop.f32.mrf.mxu2 }
 0x1a1   :  { %v1121_v31 = vmax.f32 %v1117_v27, %v1032_v29 }
 0x1a2   :  { %v1061_v32 = vpop.f32.mrf.mxu3 }
 0x1a3   :  { %v1125_v35 = vmax.f32 %v1121_v31, %v1061_v32 }
 0x1a5   :  { %v1153_v38 = vadd.f32 %v1144_v33, %v1125_v35 }
 0x1a7   :  { %1157 = vst [vmem:[%s1704_s4 + $0x10] sm:$0xff] %v1153_v38 }
 0x1a8   :  { %v1035_v39 = vpop.f32.mrf.mxu2 }
 0x1a9   :  { %v1122_v40 = vmax.f32 %v1118_v37, %v1035_v39 }
 0x1aa   :  { %v1064_v56 = vpop.f32.mrf.mxu3 }
 0x1ab   :  { %v1126_v41 = vmax.f32 %v1122_v40, %v1064_v56 }
 0x1ad   :  { %v1154_v3 = vadd.f32 %v1149_v42, %v1126_v41 }
 0x1af   :  { %1158 = vst [vmem:[%s1704_s4 + $0x18] sm:$0xff] %v1154_v3 }

</bundles_post_ra>
